<compile_context>
chip_gen: v5e
topology: v5e:2x2
jax: 0.10.0
libtpu: 0.0.40
codegen_flags: <defaults>
</compile_context>

<pallas_src>
import functools

import jax
import jax.numpy as jnp
from jax.experimental import pallas as pl
from jax.experimental.pallas import tpu as pltpu

# Environment-derived sizes (CartPole-like defaults, chosen deterministically
# since we don't have a gym env in-script).
N_STATES = 4        # env.observation_space.shape[0]
N_ACTIONS = 2       # env.action_space.n
HIDDEN = 50
BATCH = 2

# Hardware-friendly padded sizes (lane dim = 128).
HIDDEN_PAD = 128
ACTIONS_PAD = 128

# Max rows per grid step (amortizes the ~0.35us/step pipeline overhead).
MAX_TILE_B = 512


def _round_up(n, m):
    return ((n + m - 1) // m) * m


def prepare_params(w1, b1, w2, b2):
    """One-time re-layout of PyTorch-convention params.

    w1: (HIDDEN, N_STATES), b1: (HIDDEN,), w2: (N_ACTIONS, HIDDEN), b2: (N_ACTIONS,)
    Returns params pre-transposed to (in, out) and zero-padded so every matmul
    operand is (8,128)-aligned. Padded columns of w1/b1 produce zero hidden
    activations, and padded rows/cols of w2/b2 are zero, so the math is exact.
    """
    w1_p = jnp.zeros((N_STATES, HIDDEN_PAD), jnp.float32).at[:, :HIDDEN].set(w1.T)
    b1_p = jnp.zeros((1, HIDDEN_PAD), jnp.float32).at[0, :HIDDEN].set(b1)
    w2_p = jnp.zeros((HIDDEN_PAD, ACTIONS_PAD), jnp.float32).at[:HIDDEN, :N_ACTIONS].set(w2.T)
    b2_p = jnp.zeros((1, ACTIONS_PAD), jnp.float32).at[0, :N_ACTIONS].set(b2)
    return w1_p, b1_p, w2_p, b2_p


def net_kernel(x_ref, w1_ref, b1_ref, w2_ref, b2_ref, out_ref):
    # x_ref:  (TB, N_STATES)          w1_ref: (N_STATES, HIDDEN_PAD)
    # b1_ref: (1, HIDDEN_PAD)         w2_ref: (HIDDEN_PAD, ACTIONS_PAD)
    # b2_ref: (1, ACTIONS_PAD)        out_ref: (TB, ACTIONS_PAD)  (lane-dense)
    x = x_ref[...]
    # fc1 + ReLU, fused; intermediate h never leaves vregs/VMEM.
    h = jnp.dot(x, w1_ref[...], preferred_element_type=jnp.float32) + b1_ref[...]
    h = jnp.maximum(h, 0.0)
    # output head
    out = jnp.dot(h, w2_ref[...], preferred_element_type=jnp.float32) + b2_ref[...]
    out_ref[...] = out.astype(out_ref.dtype)


@functools.partial(jax.jit, static_argnames=())
def net_forward(x, params):
    """x: (B, N_STATES) f32; params from prepare_params(). Returns (B, N_ACTIONS)."""
    w1_p, b1_p, w2_p, b2_p = params
    B = x.shape[0]

    # Row tiling: biggest tile <= MAX_TILE_B, rows padded to a multiple of TB.
    tb = MAX_TILE_B if B >= MAX_TILE_B else _round_up(B, 8)
    b_pad = _round_up(B, tb)
    if b_pad != B:
        x = jnp.pad(x, ((0, b_pad - B), (0, 0)))

    const2 = lambda i: (0, 0)  # weights/biases: same block every grid step

    out_padded = pl.pallas_call(
        net_kernel,
        out_shape=jax.ShapeDtypeStruct((b_pad, ACTIONS_PAD), x.dtype),
        grid=(b_pad // tb,),
        in_specs=[
            pl.BlockSpec((tb, N_STATES), lambda i: (i, 0)),
            pl.BlockSpec(w1_p.shape, const2),
            pl.BlockSpec(b1_p.shape, const2),
            pl.BlockSpec(w2_p.shape, const2),
            pl.BlockSpec(b2_p.shape, const2),
        ],
        out_specs=pl.BlockSpec((tb, ACTIONS_PAD), lambda i: (i, 0)),
        compiler_params=pltpu.CompilerParams(
            dimension_semantics=("parallel",),
        ),
    )(x, w1_p, b1_p, w2_p, b2_p)

    # Slice padded rows / lanes back to the logical shape (cheap, fused by XLA).
    return out_padded[:B, :N_ACTIONS]


if __name__ == "__main__":
    key = jax.random.PRNGKey(0)
    k_x, k_w1, k_b1, k_w2, k_b2, k_xbig = jax.random.split(key, 6)

    # Deterministic parameter init mirroring the module:
    #   weights ~ N(0, 0.1); biases uniform like PyTorch's default Linear bias.
    w1 = 0.1 * jax.random.normal(k_w1, (HIDDEN, N_STATES), dtype=jnp.float32)
    b1 = jax.random.uniform(k_b1, (HIDDEN,), dtype=jnp.float32,
                            minval=-1.0 / jnp.sqrt(N_STATES),
                            maxval=1.0 / jnp.sqrt(N_STATES))
    w2 = 0.1 * jax.random.normal(k_w2, (N_ACTIONS, HIDDEN), dtype=jnp.float32)
    b2 = jax.random.uniform(k_b2, (N_ACTIONS,), dtype=jnp.float32,
                            minval=-1.0 / jnp.sqrt(HIDDEN),
                            maxval=1.0 / jnp.sqrt(HIDDEN))

    # One-time parameter re-layout (hoisted out of the per-call path).
    params = prepare_params(w1, b1, w2, b2)

    def ref_forward(xx):
        return jnp.maximum(xx @ w1.T + b1, 0.0) @ w2.T + b2

    # Small batch (matches the DQN action-selection use case).
    x = jax.random.normal(k_x, (BATCH, N_STATES), dtype=jnp.float32)
    actions_value = net_forward(x, params)
    jax.block_until_ready(actions_value)
    assert actions_value.shape == (BATCH, N_ACTIONS)
    assert jnp.allclose(actions_value, ref_forward(x), atol=1e-5, rtol=1e-5)

    # Larger batch exercising the multi-tile grid path.
    x_big = jax.random.normal(k_xbig, (1000, N_STATES), dtype=jnp.float32)
    out_big = net_forward(x_big, params)
    jax.block_until_ready(out_big)
    assert out_big.shape == (1000, N_ACTIONS)
    assert jnp.allclose(out_big, ref_forward(x_big), atol=1e-4, rtol=1e-4)

    print("KERNEL_OK")
</pallas_src>

<mosaic_0001>
module attributes {stable_mosaic.version = 11 : i64} {
  func.func @net_kernel(%arg0: i32, %arg1: memref<8x4xf32, #tpu.memory_space<vmem>>, %arg2: memref<4x128xf32, #tpu.memory_space<vmem>>, %arg3: memref<1x128xf32, #tpu.memory_space<vmem>>, %arg4: memref<128x128xf32, #tpu.memory_space<vmem>>, %arg5: memref<1x128xf32, #tpu.memory_space<vmem>>, %arg6: memref<8x128xf32, #tpu.memory_space<vmem>>) attributes {dimension_semantics = [#tpu.dimension_semantics<parallel>], iteration_bounds = array<i64: 1>, scalar_prefetch = 0 : i64, scratch_operands = 0 : i64, tpu.core_type = #tpu.core_type<tc>, window_params = [{transform_indices = @transform_0, window_bounds = array<i64: 8, 4>}, {pipeline_mode = #tpu.pipeline_mode<synchronous>, transform_indices = @transform_1, window_bounds = array<i64: 4, 128>}, {pipeline_mode = #tpu.pipeline_mode<synchronous>, transform_indices = @transform_2, window_bounds = array<i64: 1, 128>}, {pipeline_mode = #tpu.pipeline_mode<synchronous>, transform_indices = @transform_3, window_bounds = array<i64: 128, 128>}, {pipeline_mode = #tpu.pipeline_mode<synchronous>, transform_indices = @transform_4, window_bounds = array<i64: 1, 128>}, {transform_indices = @transform_5, window_bounds = array<i64: 8, 128>}]} {
    %c0 = arith.constant 0 : index
    %c0_0 = arith.constant 0 : index
    %0 = vector.load %arg1[%c0, %c0_0] : memref<8x4xf32, #tpu.memory_space<vmem>>, vector<8x4xf32>
    %c0_1 = arith.constant 0 : index
    %c0_2 = arith.constant 0 : index
    %1 = vector.load %arg2[%c0_1, %c0_2] : memref<4x128xf32, #tpu.memory_space<vmem>>, vector<4x128xf32>
    %cst = arith.constant dense<0.000000e+00> : vector<8x128xf32>
    %2 = tpu.matmul %0, %1, %cst {dimension_numbers = #tpu.dot_dimension_numbers<[1], [0], [0], [1], [0, 0, 1, 1], [], []>} : vector<8x4xf32>, vector<4x128xf32>, vector<8x128xf32> -> vector<8x128xf32>
    %c0_3 = arith.constant 0 : index
    %c0_4 = arith.constant 0 : index
    %3 = vector.load %arg3[%c0_3, %c0_4] : memref<1x128xf32, #tpu.memory_space<vmem>>, vector<1x128xf32>
    %4 = vector.broadcast %3 : vector<1x128xf32> to vector<8x128xf32>
    %5 = arith.addf %2, %4 : vector<8x128xf32>
    %cst_5 = arith.constant 0.000000e+00 : f32
    %6 = vector.broadcast %cst_5 : f32 to vector<8x128xf32>
    %7 = arith.maximumf %5, %6 : vector<8x128xf32>
    %c0_6 = arith.constant 0 : index
    %c0_7 = arith.constant 0 : index
    %8 = vector.load %arg4[%c0_6, %c0_7] : memref<128x128xf32, #tpu.memory_space<vmem>>, vector<128x128xf32>
    %cst_8 = arith.constant dense<0.000000e+00> : vector<8x128xf32>
    %9 = tpu.matmul %7, %8, %cst_8 {dimension_numbers = #tpu.dot_dimension_numbers<[1], [0], [0], [1], [0, 0, 1, 1], [], []>} : vector<8x128xf32>, vector<128x128xf32>, vector<8x128xf32> -> vector<8x128xf32>
    %c0_9 = arith.constant 0 : index
    %c0_10 = arith.constant 0 : index
    %10 = vector.load %arg5[%c0_9, %c0_10] : memref<1x128xf32, #tpu.memory_space<vmem>>, vector<1x128xf32>
    %11 = vector.broadcast %10 : vector<1x128xf32> to vector<8x128xf32>
    %12 = arith.addf %9, %11 : vector<8x128xf32>
    %c0_11 = arith.constant 0 : index
    %c0_12 = arith.constant 0 : index
    %13 = vector.load %arg6[%c0_11, %c0_12] : memref<8x128xf32, #tpu.memory_space<vmem>>, vector<8x128xf32>
    tpu.vector_store %arg6[%c0_11, %c0_12], %12 {strides = array<i32>} : memref<8x128xf32, #tpu.memory_space<vmem>>, vector<8x128xf32>,
    return
  }
  func.func @transform_0(%arg0: i32) -> (i32, i32) {
    %c0_i32 = arith.constant 0 : i32
    %c0_i32_0 = arith.constant 0 : i32
    return %arg0, %c0_i32 : i32, i32
  }
  func.func @transform_1(%arg0: i32) -> (i32, i32) {
    %c0_i32 = arith.constant 0 : i32
    %c0_i32_0 = arith.constant 0 : i32
    %c0_i32_1 = arith.constant 0 : i32
    return %c0_i32, %c0_i32_0 : i32, i32
  }
  func.func @transform_2(%arg0: i32) -> (i32, i32) {
    %c0_i32 = arith.constant 0 : i32
    %c0_i32_0 = arith.constant 0 : i32
    %c0_i32_1 = arith.constant 0 : i32
    return %c0_i32, %c0_i32_0 : i32, i32
  }
  func.func @transform_3(%arg0: i32) -> (i32, i32) {
    %c0_i32 = arith.constant 0 : i32
    %c0_i32_0 = arith.constant 0 : i32
    %c0_i32_1 = arith.constant 0 : i32
    return %c0_i32, %c0_i32_0 : i32, i32
  }
  func.func @transform_4(%arg0: i32) -> (i32, i32) {
    %c0_i32 = arith.constant 0 : i32
    %c0_i32_0 = arith.constant 0 : i32
    %c0_i32_1 = arith.constant 0 : i32
    return %c0_i32, %c0_i32_0 : i32, i32
  }
  func.func @transform_5(%arg0: i32) -> (i32, i32) {
    %c0_i32 = arith.constant 0 : i32
    %c0_i32_0 = arith.constant 0 : i32
    return %arg0, %c0_i32 : i32, i32
  }
}

</mosaic_0001>

<bundles_post_ra>
// kernel: net_forward.1
= control target key start
LH: loop header
LB: loop body
LE: loop exit
PB: predicated region body
PF: predicated region fallthrough
CT: control target
= control target key end

     0   :  { %10 = vsyncpa [#allocation3], 0  ;;  %s150_s21 = smov [#allocation2]   ;;  %s151_s23 = smov 128   ;;  %s201_s0 = inlined_call_operand.vmem [shape: f32[8,4], index: 0, kind: input, shape index: {}]   ;;  %s202_s1 = inlined_call_operand.vmem [shape: f32[4,128], index: 1, kind: input, shape index: {}]   ;;  %s203_s2 = inlined_call_operand.vmem [shape: f32[1,128], index: 2, kind: input, shape index: {}]   ;;  %s204_s3 = inlined_call_operand.hbm [shape: f32[128,128], index: 3, kind: input, shape index: {}]   ;;  %s205_s4 = inlined_call_operand.vmem [shape: f32[1,128], index: 4, kind: input, shape index: {}]   ;;  %s206_s5 = inlined_call_operand.vmem [shape: f32[8,128], index: 5, kind: output, shape index: {}]  }
   0x1   :  { %s21_s20 = sshll.u32 %s204_s3, 4  ;;  %s23_s22 = sshll.u32 %s150_s21, 4  ;;  %s22_s20 = int_to_ptr.hbm [resolvable:$true] %s21_s20  ;;  %s24_s22 = int_to_ptr.vmem [resolvable:$true] %s23_s22 }
   0x2   :  { %s152_s24 = smov 8  }
   0x3   :  { %29 = dma.hbm_to_vmem [thread:$0]  %s22_s20, 2048, %s24_s22, [#allocation3], %s151_s23, %s151_s23, %s152_s24  }
   0x4   :  { %148 = dma.done.wait [#allocation3], 2048  }
   0x5   :  { %149 = vsyncadd [#allocation3], 4294965248  ;;  %vm46_vm0 = vcmask 1043456   ;;  %vm42_vm1 = vcmask 31744   ;;  %v37_v0 = vld [vmem:[%s202_s1] sm:$0xf] }
   0x6   :  { %v36_v1 = vld [vmem:[%s201_s0] sm:$0xff]  ;;  %v86_v2 = vld [vmem:[#allocation2 + $0x78] sm:$0xff]  ;;  %117 = vmatpush.msk.msra.mxu0 %vm46_vm0, %v37_v0  ;;  %v85_v3 = vld [vmem:[#allocation2 + $0x70] sm:$0xff] }
   0x7   :  { %91 = vmatpush.msra.mxu1 %v86_v2  ;;  %118 = vmatmul.msk.f32.vlgmr.msra.gmra.mxu0 %vm42_vm1, %v36_v1  ;;  %v84_v4 = vld [vmem:[#allocation2 + $0x68] sm:$0xff]  ;;  %v83_v5 = vld [vmem:[#allocation2 + $0x60] sm:$0xff]  ;;  %v82_v6 = vld [vmem:[#allocation2 + $0x58] sm:$0xff] }
   0x8   :  { %v81_v7 = vld [vmem:[#allocation2 + $0x50] sm:$0xff]  ;;  %v80_v8 = vld [vmem:[#allocation2 + $0x48] sm:$0xff]  ;;  %v79_v9 = vld [vmem:[#allocation2 + $0x40] sm:$0xff] }
   0x9   :  { %92 = vmatpush.msra.mxu1 %v85_v3  ;;  %v78_v10 = vld [vmem:[#allocation2 + $0x38] sm:$0xff]  ;;  %v77_v11 = vld [vmem:[#allocation2 + $0x30] sm:$0xff]  ;;  %v76_v12 = vld [vmem:[#allocation2 + $0x28] sm:$0xff] }
   0xa   :  { %v75_v13 = vld [vmem:[#allocation2 + $0x20] sm:$0xff]  ;;  %v74_v14 = vld [vmem:[#allocation2 + $0x18] sm:$0xff]  ;;  %v73_v15 = vld [vmem:[#allocation2 + $0x10] sm:$0xff] }
   0xb   :  { %93 = vmatpush.msra.mxu1 %v84_v4  ;;  %v72_v16 = vld [vmem:[#allocation2 + $0x8] sm:$0xff]  ;;  %v71_v17 = vld [vmem:[#allocation2] sm:$0xff] }
   0xc   :  { %v122_v18 = vld [vmem:[%s203_s2] ss:$0 sm:$0xff] }
   0xd   :  { %94 = vmatpush.msra.mxu1 %v83_v5  ;;  %v123_v22 = vld [vmem:[%s205_s4] ss:$0 sm:$0xff] }
   0xf   :  { %95 = vmatpush.msra.mxu1 %v82_v6 }
  0x11   :  { %96 = vmatpush.msra.mxu1 %v81_v7 }
  0x13   :  { %97 = vmatpush.msra.mxu1 %v80_v8 }
  0x15   :  { %98 = vmatpush.msra.mxu1 %v79_v9 }
  0x17   :  { %99 = vmatpush.msra.mxu1 %v78_v10 }
  0x19   :  { %100 = vmatpush.msra.mxu1 %v77_v11 }
  0x1b   :  { %101 = vmatpush.msra.mxu1 %v76_v12 }
  0x1d   :  { %102 = vmatpush.msra.mxu1 %v75_v13 }
  0x1f   :  { %103 = vmatpush.msra.mxu1 %v74_v14 }
  0x21   :  { %104 = vmatpush.msra.mxu1 %v73_v15 }
  0x23   :  { %105 = vmatpush.msra.mxu1 %v72_v16 }
  0x25   :  { %106 = vmatpush.msra.mxu1 %v71_v17 }
  0x84   :  { %v67_v19 = vpop.f32.mrf.mxu0 }
  0x85   :  { %v68_v20 = vadd.f32 %v122_v18, %v67_v19 }
  0x87   :  { %v70_v21 = vmax.f32 %v68_v20, 0.0 }
  0x89   :  { %107 = vmatmul.f32.vlgmr.msra.gmra.mxu1 %v70_v21 }
 0x106   :  { %v108_v23 = vpop.f32.mrf.mxu1 }
 0x107   :  { %v109_v24 = vadd.f32 %v123_v22, %v108_v23 }
 0x109   :  { %111 = vst [vmem:[%s206_s5] sm:$0xff] %v109_v24 }
 0x10a   :  { %116 = vsyncpa [#allocation3], 1 }

</bundles_post_ra>
